<compile_context>
chip_gen: v5e
topology: v5e:2x2
jax: 0.10.0
libtpu: 0.0.40
codegen_flags: <defaults>
</compile_context>

<pallas_src>
import functools

import jax
import jax.numpy as jnp
from jax.experimental import pallas as pl
from jax.experimental.pallas import tpu as pltpu

EPS = 1e-5          # PyTorch GroupNorm default
LANE = 128          # TPU vreg lane width
LANE_TARGET = 1024  # target lane-tile width (large multiple of 128)


def _conv_gn_mish_kernel(slab_ref, w_ref, gb_ref, o_ref, *,
                         B, T_lane, T_valid, G, cpg, approx_mish):
    # slab_ref: (K*C_in + 1, B*T_lane)  im2col slab + ones row (bias), bf16/f32
    # w_ref:    (C_out, K*C_in + 1)     flattened conv weight + bias column
    # gb_ref:   (C_out, 2)              packed [gamma | beta], f32
    # o_ref:    (C_out, B*T_lane)       lane-dense output tile, f32
    f32 = jnp.float32
    lanes = B * T_lane

    # ---- Conv1d (+ bias via ones-row / bias-column): ONE MXU matmul ----
    y = jnp.dot(w_ref[...], slab_ref[...], preferred_element_type=f32)   # (C_out, lanes)
    C_out = y.shape[0]

    gamma = gb_ref[:, 0:1]
    beta = gb_ref[:, 1:2]

    # ---- One-hot helper matrices, generated in-kernel (no HBM traffic) ----
    # Group assignment: mask[g, c] = 1 iff channel c is in group g.
    gi = jax.lax.broadcasted_iota(jnp.int32, (G, C_out), 0)
    ci = jax.lax.broadcasted_iota(jnp.int32, (G, C_out), 1)
    mask = ((ci >= gi * cpg) & (ci < (gi + 1) * cpg)).astype(f32)         # (G, C_out)
    gi2 = jax.lax.broadcasted_iota(jnp.int32, (C_out, G), 1)
    ci2 = jax.lax.broadcasted_iota(jnp.int32, (C_out, G), 0)
    maskT = ((ci2 >= gi2 * cpg) & (ci2 < (gi2 + 1) * cpg)).astype(f32)    # (C_out, G)

    # Sample assignment over the lane-packed (b, t) axis.  `sel` also zeroes
    # time-padding lanes (t >= T_valid) so they are excluded from the stats.
    l1 = jax.lax.broadcasted_iota(jnp.int32, (lanes, B), 0)
    b1 = jax.lax.broadcasted_iota(jnp.int32, (lanes, B), 1)
    lo1 = b1 * T_lane
    sel = ((l1 >= lo1) & (l1 < lo1 + T_valid)).astype(f32)                # (lanes, B)
    l2 = jax.lax.broadcasted_iota(jnp.int32, (B, lanes), 1)
    b2 = jax.lax.broadcasted_iota(jnp.int32, (B, lanes), 0)
    lo2 = b2 * T_lane
    selT = ((l2 >= lo2) & (l2 < lo2 + T_lane)).astype(f32)                # (B, lanes)

    inv_n = 1.0 / float(cpg * T_valid)

    # ---- GroupNorm (per sample, per group), numerically-safe two-pass ----
    s1 = jnp.dot(y, sel, preferred_element_type=f32)                      # (C_out, B)
    mean_g = jnp.dot(mask, s1, preferred_element_type=f32) * inv_n        # (G, B)
    mean_c = jnp.dot(maskT, mean_g, preferred_element_type=f32)           # (C_out, B)
    mean_full = jnp.dot(mean_c, selT, preferred_element_type=f32)         # (C_out, lanes)
    yc = y - mean_full

    s2 = jnp.dot(yc * yc, sel, preferred_element_type=f32)                # (C_out, B)
    var_g = jnp.dot(mask, s2, preferred_element_type=f32) * inv_n         # (G, B)
    rstd_g = jax.lax.rsqrt(var_g + EPS)                                   # (G, B)
    scale_c = jnp.dot(maskT, rstd_g, preferred_element_type=f32) * gamma  # (C_out, B)
    scale_full = jnp.dot(scale_c, selT, preferred_element_type=f32)       # (C_out, lanes)
    z = yc * scale_full + beta                                            # (C_out, lanes)

    # ---- Mish: z * tanh(softplus(z)) = z * ((1+e^z)^2 - 1)/((1+e^z)^2 + 1) ----
    zc = jnp.minimum(z, 20.0)              # overflow guard; tanh(softplus(20)) == 1 in f32
    e = jnp.exp(zc)
    p2 = (1.0 + e) * (1.0 + e)
    if approx_mish:
        inv = pl.reciprocal(p2 + 1.0, approx=True)
    else:
        inv = 1.0 / (p2 + 1.0)
    o_ref[...] = (z * (p2 - 1.0) * inv).astype(o_ref.dtype)


def conv1d_block(x, weight, bias, gamma, beta, *, n_groups,
                 use_bf16=True, approx_mish=True):
    """Conv1d(padding=K//2) -> GroupNorm(n_groups) -> Mish.

    x:      (N, C_in, T) f32
    weight: (C_out, C_in, K)  (PyTorch nn.Conv1d layout)
    bias, gamma, beta: (C_out,)
    Returns (N, C_out, T_out) f32, T_out = T + 2*(K//2) - (K-1).
    """
    N, C_in, T = x.shape
    C_out, _, K = weight.shape
    assert C_out % n_groups == 0
    cpg = C_out // n_groups
    pad = K // 2
    T_out = T + 2 * pad - (K - 1)

    # ---- Lane-tile geometry ----
    if T_out % LANE == 0 or LANE % T_out == 0:
        T_lane = T_out
    else:
        # Pad time up to the next multiple of 128; padded lanes are masked
        # out of the GroupNorm statistics in-kernel and sliced off at the end.
        T_lane = -(-T_out // LANE) * LANE
    unit = 1 if T_lane % LANE == 0 else LANE // T_lane   # b_tile granularity
    b_full = -(-N // unit) * unit
    b_cap = max(unit, (LANE_TARGET // T_lane) // unit * unit)
    b_tile = min(b_cap, b_full)
    # Prefer >= 2 grid steps so v7x's two TensorCores both get work
    # (grid axis is "parallel"); per-step overhead (~0.35us) is negligible.
    if -(-N // b_tile) < 2 and b_tile >= 2 * unit:
        b_tile = -(-(b_tile // 2) // unit) * unit
    n_tiles = -(-N // b_tile)
    n_pad = n_tiles * b_tile
    lanes = b_tile * T_lane

    conv_dtype = jnp.bfloat16 if use_bf16 else jnp.float32

    # ---- Wrapper-side im2col: lane-dense slab (K*C_in + 1, n_pad*T_lane) ----
    x_p = jnp.pad(x, ((0, n_pad - N), (0, 0), (pad, pad)))       # (n_pad, C_in, T+2*pad)
    taps = []
    for k in range(K):
        tap = x_p[:, :, k:k + T_out]                              # (n_pad, C_in, T_out)
        if T_lane != T_out:
            tap = jnp.pad(tap, ((0, 0), (0, 0), (0, T_lane - T_out)))
        taps.append(tap)
    slab = jnp.stack(taps, axis=0)                                # (K, n_pad, C_in, T_lane)
    slab = slab.transpose(0, 2, 1, 3).reshape(K * C_in, n_pad * T_lane)
    ones = jnp.ones((1, n_pad * T_lane), slab.dtype)              # bias row
    slab = jnp.concatenate([slab, ones], axis=0).astype(conv_dtype)

    # Flattened conv weight + bias column: w_aug[co, k*C_in+ci] = weight[co, ci, k]
    w_flat = jnp.transpose(weight, (0, 2, 1)).reshape(C_out, K * C_in)
    w_aug = jnp.concatenate([w_flat, bias[:, None]], axis=1).astype(conv_dtype)

    gb = jnp.stack([gamma, beta], axis=1).astype(jnp.float32)     # (C_out, 2)

    kernel = functools.partial(_conv_gn_mish_kernel, B=b_tile, T_lane=T_lane,
                               T_valid=T_out, G=n_groups, cpg=cpg,
                               approx_mish=approx_mish)

    # NOTE: w_aug / gb are grid-invariant; Pallas re-uses the buffer when the
    # block index doesn't change.  For realistic channel counts, single-buffer
    # them (pipeline_mode=pl.Buffered(1)) to save VMEM on v7x.
    out_flat = pl.pallas_call(
        kernel,
        out_shape=jax.ShapeDtypeStruct((C_out, n_pad * T_lane), jnp.float32),
        grid_spec=pltpu.PrefetchScalarGridSpec(
            num_scalar_prefetch=0,
            grid=(n_tiles,),
            in_specs=[
                pl.BlockSpec((K * C_in + 1, lanes), lambda i: (0, i)),
                pl.BlockSpec((C_out, K * C_in + 1), lambda i: (0, 0)),
                pl.BlockSpec((C_out, 2), lambda i: (0, 0)),
            ],
            out_specs=pl.BlockSpec((C_out, lanes), lambda i: (0, i)),
        ),
        compiler_params=pltpu.CompilerParams(
            dimension_semantics=("parallel",),        # >=2 tiles feeds both v7x TCs
            vmem_limit_bytes=32 * 1024 * 1024,        # explicit; fits v7x 64 MiB VMEM
        ),
    )(slab, w_aug, gb)

    # Layout plumbing only: (C_out, n_pad*T_lane) -> (N, C_out, T_out).
    out = out_flat.reshape(C_out, n_pad, T_lane)[:, :N, :T_out].transpose(1, 0, 2)
    return out


def reference_forward(x, weight, bias, gamma, beta, *, n_groups):
    """Pure-JAX reference matching nn.Sequential(Conv1d, GroupNorm, Mish)."""
    K = weight.shape[-1]
    y = jax.lax.conv_general_dilated(
        x, weight, window_strides=(1,), padding=[(K // 2, K // 2)],
        dimension_numbers=("NCH", "OIH", "NCH"))
    y = y + bias.reshape(1, -1, 1)
    N, C, T = y.shape
    yg = y.reshape(N, n_groups, -1)
    mean = yg.mean(-1, keepdims=True)
    var = yg.var(-1, keepdims=True)
    yn = ((yg - mean) / jnp.sqrt(var + EPS)).reshape(N, C, T)
    z = yn * gamma.reshape(1, -1, 1) + beta.reshape(1, -1, 1)
    return z * jnp.tanh(jax.nn.softplus(z))


if __name__ == "__main__":
    # Small shapes consistent with Conv1dBlock.  N*T_out = 512 lanes total,
    # so the kernel runs 2 parallel grid steps of 256-lane tiles.
    N, C_in, C_out, T, K, n_groups = 32, 8, 16, 16, 3, 8

    key = jax.random.PRNGKey(0)
    kx, kw, kb, kg, kbt = jax.random.split(key, 5)

    x = jax.random.normal(kx, (N, C_in, T), dtype=jnp.float32)

    bound = 1.0 / (C_in * K) ** 0.5
    weight = jax.random.uniform(kw, (C_out, C_in, K), jnp.float32, -bound, bound)
    bias = jax.random.uniform(kb, (C_out,), jnp.float32, -bound, bound)
    gamma = 1.0 + 0.1 * jax.random.normal(kg, (C_out,), jnp.float32)
    beta = 0.1 * jax.random.normal(kbt, (C_out,), jnp.float32)

    ref = reference_forward(x, weight, bias, gamma, beta, n_groups=n_groups)

    # Precise path (f32 MXU operands, exact Mish divide): tight structural check.
    out_f32 = jax.block_until_ready(
        conv1d_block(x, weight, bias, gamma, beta, n_groups=n_groups,
                     use_bf16=False, approx_mish=False))
    assert out_f32.shape == ref.shape
    err32 = float(jnp.abs(out_f32 - ref).max())
    assert jnp.allclose(out_f32, ref, atol=2e-3, rtol=2e-3), err32

    # Fast path (bf16 MXU operands + approx reciprocal Mish): perf configuration.
    out_fast = jax.block_until_ready(
        conv1d_block(x, weight, bias, gamma, beta, n_groups=n_groups,
                     use_bf16=True, approx_mish=True))
    errfast = float(jnp.abs(out_fast - ref).max())
    assert jnp.allclose(out_fast, ref, atol=5e-2, rtol=5e-2), errfast

    print("KERNEL_OK")
</pallas_src>

<mosaic_0001>
module attributes {stable_mosaic.version = 11 : i64} {
  func.func @_conv_gn_mish_kernel(%arg0: i32, %arg1: memref<25x256xf32, #tpu.memory_space<vmem>>, %arg2: memref<16x25xf32, #tpu.memory_space<vmem>>, %arg3: memref<16x2xf32, #tpu.memory_space<vmem>>, %arg4: memref<16x256xf32, #tpu.memory_space<vmem>>) attributes {dimension_semantics = [#tpu.dimension_semantics<parallel>], iteration_bounds = array<i64: 2>, scalar_prefetch = 0 : i64, scratch_operands = 0 : i64, tpu.core_type = #tpu.core_type<tc>, window_params = [{transform_indices = @transform_0, window_bounds = array<i64: 25, 256>}, {pipeline_mode = #tpu.pipeline_mode<synchronous>, transform_indices = @transform_1, window_bounds = array<i64: 16, 25>}, {pipeline_mode = #tpu.pipeline_mode<synchronous>, transform_indices = @transform_2, window_bounds = array<i64: 16, 2>}, {transform_indices = @transform_3, window_bounds = array<i64: 16, 256>}]} {
    %c0 = arith.constant 0 : index
    %c0_0 = arith.constant 0 : index
    %0 = vector.load %arg2[%c0, %c0_0] : memref<16x25xf32, #tpu.memory_space<vmem>>, vector<16x25xf32>
    %c0_1 = arith.constant 0 : index
    %c0_2 = arith.constant 0 : index
    %1 = vector.load %arg1[%c0_1, %c0_2] : memref<25x256xf32, #tpu.memory_space<vmem>>, vector<25x256xf32>
    %cst = arith.constant dense<0.000000e+00> : vector<16x256xf32>
    %2 = tpu.matmul %0, %1, %cst {dimension_numbers = #tpu.dot_dimension_numbers<[1], [0], [0], [1], [0, 0, 1, 1], [], []>} : vector<16x25xf32>, vector<25x256xf32>, vector<16x256xf32> -> vector<16x256xf32>
    %c0_3 = arith.constant 0 : index
    %c0_4 = arith.constant 0 : index
    %3 = vector.load %arg3[%c0_3, %c0_4] : memref<16x2xf32, #tpu.memory_space<vmem>>, vector<16x1xf32>
    %c0_5 = arith.constant 0 : index
    %c1 = arith.constant 1 : index
    %4 = vector.load %arg3[%c0_5, %c1] : memref<16x2xf32, #tpu.memory_space<vmem>>, vector<16x1xf32>
    %5 = tpu.iota {dimensions = array<i32: 0>} : vector<8x16xi32>
    %6 = tpu.iota {dimensions = array<i32: 1>} : vector<8x16xi32>
    %c2_i32 = arith.constant 2 : i32
    %7 = vector.broadcast %c2_i32 : i32 to vector<8x16xi32>
    %8 = arith.muli %5, %7 : vector<8x16xi32>
    %9 = arith.cmpi sge, %6, %8 : vector<8x16xi32>
    %c1_i32 = arith.constant 1 : i32
    %10 = vector.broadcast %c1_i32 : i32 to vector<8x16xi32>
    %11 = arith.addi %5, %10 : vector<8x16xi32>
    %c2_i32_6 = arith.constant 2 : i32
    %12 = vector.broadcast %c2_i32_6 : i32 to vector<8x16xi32>
    %13 = arith.muli %11, %12 : vector<8x16xi32>
    %14 = arith.cmpi slt, %6, %13 : vector<8x16xi32>
    %15 = arith.andi %9, %14 : vector<8x16xi1>
    %16 = arith.extui %15 : vector<8x16xi1> to vector<8x16xi32>
    %17 = arith.sitofp %16 : vector<8x16xi32> to vector<8x16xf32>
    %18 = tpu.iota {dimensions = array<i32: 1>} : vector<16x8xi32>
    %19 = tpu.iota {dimensions = array<i32: 0>} : vector<16x8xi32>
    %c2_i32_7 = arith.constant 2 : i32
    %20 = vector.broadcast %c2_i32_7 : i32 to vector<16x8xi32>
    %21 = arith.muli %18, %20 : vector<16x8xi32>
    %22 = arith.cmpi sge, %19, %21 : vector<16x8xi32>
    %c1_i32_8 = arith.constant 1 : i32
    %23 = vector.broadcast %c1_i32_8 : i32 to vector<16x8xi32>
    %24 = arith.addi %18, %23 : vector<16x8xi32>
    %c2_i32_9 = arith.constant 2 : i32
    %25 = vector.broadcast %c2_i32_9 : i32 to vector<16x8xi32>
    %26 = arith.muli %24, %25 : vector<16x8xi32>
    %27 = arith.cmpi slt, %19, %26 : vector<16x8xi32>
    %28 = arith.andi %22, %27 : vector<16x8xi1>
    %29 = arith.extui %28 : vector<16x8xi1> to vector<16x8xi32>
    %30 = arith.sitofp %29 : vector<16x8xi32> to vector<16x8xf32>
    %31 = tpu.iota {dimensions = array<i32: 0>} : vector<256x16xi32>
    %32 = tpu.iota {dimensions = array<i32: 1>} : vector<256x16xi32>
    %c16_i32 = arith.constant 16 : i32
    %33 = vector.broadcast %c16_i32 : i32 to vector<256x16xi32>
    %34 = arith.muli %32, %33 : vector<256x16xi32>
    %35 = arith.cmpi sge, %31, %34 : vector<256x16xi32>
    %c16_i32_10 = arith.constant 16 : i32
    %36 = vector.broadcast %c16_i32_10 : i32 to vector<256x16xi32>
    %37 = arith.addi %34, %36 : vector<256x16xi32>
    %38 = arith.cmpi slt, %31, %37 : vector<256x16xi32>
    %39 = arith.andi %35, %38 : vector<256x16xi1>
    %40 = arith.extui %39 : vector<256x16xi1> to vector<256x16xi32>
    %41 = arith.sitofp %40 : vector<256x16xi32> to vector<256x16xf32>
    %42 = tpu.iota {dimensions = array<i32: 1>} : vector<16x256xi32>
    %43 = tpu.iota {dimensions = array<i32: 0>} : vector<16x256xi32>
    %c16_i32_11 = arith.constant 16 : i32
    %44 = vector.broadcast %c16_i32_11 : i32 to vector<16x256xi32>
    %45 = arith.muli %43, %44 : vector<16x256xi32>
    %46 = arith.cmpi sge, %42, %45 : vector<16x256xi32>
    %c16_i32_12 = arith.constant 16 : i32
    %47 = vector.broadcast %c16_i32_12 : i32 to vector<16x256xi32>
    %48 = arith.addi %45, %47 : vector<16x256xi32>
    %49 = arith.cmpi slt, %42, %48 : vector<16x256xi32>
    %50 = arith.andi %46, %49 : vector<16x256xi1>
    %51 = arith.extui %50 : vector<16x256xi1> to vector<16x256xi32>
    %52 = arith.sitofp %51 : vector<16x256xi32> to vector<16x256xf32>
    %cst_13 = arith.constant dense<0.000000e+00> : vector<16x16xf32>
    %53 = tpu.matmul %2, %41, %cst_13 {dimension_numbers = #tpu.dot_dimension_numbers<[1], [0], [0], [1], [0, 0, 1, 1], [], []>} : vector<16x256xf32>, vector<256x16xf32>, vector<16x16xf32> -> vector<16x16xf32>
    %cst_14 = arith.constant dense<0.000000e+00> : vector<8x16xf32>
    %54 = tpu.matmul %17, %53, %cst_14 {dimension_numbers = #tpu.dot_dimension_numbers<[1], [0], [0], [1], [0, 0, 1, 1], [], []>} : vector<8x16xf32>, vector<16x16xf32>, vector<8x16xf32> -> vector<8x16xf32>
    %cst_15 = arith.constant 3.125000e-02 : f32
    %55 = vector.broadcast %cst_15 : f32 to vector<8x16xf32>
    %56 = arith.mulf %54, %55 : vector<8x16xf32>
    %cst_16 = arith.constant dense<0.000000e+00> : vector<16x16xf32>
    %57 = tpu.matmul %30, %56, %cst_16 {dimension_numbers = #tpu.dot_dimension_numbers<[1], [0], [0], [1], [0, 0, 1, 1], [], []>} : vector<16x8xf32>, vector<8x16xf32>, vector<16x16xf32> -> vector<16x16xf32>
    %cst_17 = arith.constant dense<0.000000e+00> : vector<16x256xf32>
    %58 = tpu.matmul %57, %52, %cst_17 {dimension_numbers = #tpu.dot_dimension_numbers<[1], [0], [0], [1], [0, 0, 1, 1], [], []>} : vector<16x16xf32>, vector<16x256xf32>, vector<16x256xf32> -> vector<16x256xf32>
    %59 = arith.subf %2, %58 : vector<16x256xf32>
    %60 = arith.mulf %59, %59 : vector<16x256xf32>
    %cst_18 = arith.constant dense<0.000000e+00> : vector<16x16xf32>
    %61 = tpu.matmul %60, %41, %cst_18 {dimension_numbers = #tpu.dot_dimension_numbers<[1], [0], [0], [1], [0, 0, 1, 1], [], []>} : vector<16x256xf32>, vector<256x16xf32>, vector<16x16xf32> -> vector<16x16xf32>
    %cst_19 = arith.constant dense<0.000000e+00> : vector<8x16xf32>
    %62 = tpu.matmul %17, %61, %cst_19 {dimension_numbers = #tpu.dot_dimension_numbers<[1], [0], [0], [1], [0, 0, 1, 1], [], []>} : vector<8x16xf32>, vector<16x16xf32>, vector<8x16xf32> -> vector<8x16xf32>
    %cst_20 = arith.constant 3.125000e-02 : f32
    %63 = vector.broadcast %cst_20 : f32 to vector<8x16xf32>
    %64 = arith.mulf %62, %63 : vector<8x16xf32>
    %cst_21 = arith.constant 9.99999974E-6 : f32
    %65 = vector.broadcast %cst_21 : f32 to vector<8x16xf32>
    %66 = arith.addf %64, %65 : vector<8x16xf32>
    %67 = math.rsqrt %66 : vector<8x16xf32>
    %cst_22 = arith.constant dense<0.000000e+00> : vector<16x16xf32>
    %68 = tpu.matmul %30, %67, %cst_22 {dimension_numbers = #tpu.dot_dimension_numbers<[1], [0], [0], [1], [0, 0, 1, 1], [], []>} : vector<16x8xf32>, vector<8x16xf32>, vector<16x16xf32> -> vector<16x16xf32>
    %69 = vector.broadcast %3 : vector<16x1xf32> to vector<16x16xf32>
    %70 = arith.mulf %68, %69 : vector<16x16xf32>
    %cst_23 = arith.constant dense<0.000000e+00> : vector<16x256xf32>
    %71 = tpu.matmul %70, %52, %cst_23 {dimension_numbers = #tpu.dot_dimension_numbers<[1], [0], [0], [1], [0, 0, 1, 1], [], []>} : vector<16x16xf32>, vector<16x256xf32>, vector<16x256xf32> -> vector<16x256xf32>
    %72 = arith.mulf %59, %71 : vector<16x256xf32>
    %73 = vector.broadcast %4 : vector<16x1xf32> to vector<16x256xf32>
    %74 = arith.addf %72, %73 : vector<16x256xf32>
    %cst_24 = arith.constant 2.000000e+01 : f32
    %75 = vector.broadcast %cst_24 : f32 to vector<16x256xf32>
    %76 = arith.minimumf %74, %75 : vector<16x256xf32>
    %77 = math.exp %76 : vector<16x256xf32>
    %cst_25 = arith.constant 1.000000e+00 : f32
    %78 = vector.broadcast %cst_25 : f32 to vector<16x256xf32>
    %79 = arith.addf %78, %77 : vector<16x256xf32>
    %cst_26 = arith.constant 1.000000e+00 : f32
    %80 = vector.broadcast %cst_26 : f32 to vector<16x256xf32>
    %81 = arith.addf %80, %77 : vector<16x256xf32>
    %82 = arith.mulf %79, %81 : vector<16x256xf32>
    %cst_27 = arith.constant 1.000000e+00 : f32
    %83 = vector.broadcast %cst_27 : f32 to vector<16x256xf32>
    %84 = arith.addf %82, %83 : vector<16x256xf32>
    %cst_28 = arith.constant 1.000000e+00 : f32
    %85 = vector.broadcast %cst_28 : f32 to vector<16x256xf32>
    %86 = arith.divf %85, %84 : vector<16x256xf32>
    %cst_29 = arith.constant 1.000000e+00 : f32
    %87 = vector.broadcast %cst_29 : f32 to vector<16x256xf32>
    %88 = arith.subf %82, %87 : vector<16x256xf32>
    %89 = arith.mulf %74, %88 : vector<16x256xf32>
    %90 = arith.mulf %89, %86 : vector<16x256xf32>
    %c0_30 = arith.constant 0 : index
    %c0_31 = arith.constant 0 : index
    %91 = vector.load %arg4[%c0_30, %c0_31] : memref<16x256xf32, #tpu.memory_space<vmem>>, vector<16x256xf32>
    tpu.vector_store %arg4[%c0_30, %c0_31], %90 {strides = array<i32>} : memref<16x256xf32, #tpu.memory_space<vmem>>, vector<16x256xf32>,
    return
  }
  func.func @transform_0(%arg0: i32) -> (i32, i32) {
    %c0_i32 = arith.constant 0 : i32
    %c0_i32_0 = arith.constant 0 : i32
    return %c0_i32, %arg0 : i32, i32
  }
  func.func @transform_1(%arg0: i32) -> (i32, i32) {
    %c0_i32 = arith.constant 0 : i32
    %c0_i32_0 = arith.constant 0 : i32
    %c0_i32_1 = arith.constant 0 : i32
    return %c0_i32, %c0_i32_0 : i32, i32
  }
  func.func @transform_2(%arg0: i32) -> (i32, i32) {
    %c0_i32 = arith.constant 0 : i32
    %c0_i32_0 = arith.constant 0 : i32
    %c0_i32_1 = arith.constant 0 : i32
    return %c0_i32, %c0_i32_0 : i32, i32
  }
  func.func @transform_3(%arg0: i32) -> (i32, i32) {
    %c0_i32 = arith.constant 0 : i32
    %c0_i32_0 = arith.constant 0 : i32
    return %c0_i32, %arg0 : i32, i32
  }
}

</mosaic_0001>

<bundles_post_ra>
// kernel: tpu_custom_call.1
= control target key start
LH: loop header
LB: loop body
LE: loop exit
PB: predicated region body
PF: predicated region fallthrough
CT: control target
= control target key end

     0   :  { %8 = vsyncpa [#allocation3], 0  ;;  %s2160_s0 = inlined_call_operand.hbm [shape: f32[25,512], index: 0, kind: input, shape index: {}]   ;;  %s2161_s1 = inlined_call_operand.vmem [shape: f32[16,25], index: 1, kind: input, shape index: {}]   ;;  %s2162_s2 = inlined_call_operand.vmem [shape: f32[16,2], index: 2, kind: input, shape index: {}]   ;;  %s2163_s3 = inlined_call_operand.hbm [shape: f32[16,512], index: 3, kind: output, shape index: {}]  }
   0x1   :  { %10 = vsyncpa [#allocation3 + $0x1], 0 }
   0x2   :  { %11 = vsyncpa [#allocation4], 0 }
   0x3   :  { %13 = vsyncpa [#allocation4 + $0x1], 0  ;;  %s1395_s12 = smov 0   ;;  %s1397_s13 = smov 0  }
   0x4   :  { %s1399_s14 = smov 0   ;;  %s1401_s15 = smov 0  }
   0x5 LB: > { %s1416_s16 = sadd.s32 4294967295, %s1363_s15   ;;  %s1039_s17 = sadd.s32 4294967294, %s1363_s15   ;;  %s1363_s15 = sphi %s1401_s15, %s2295_s15   ;;  %s1359_s14 = sphi %s1399_s14, %s2294_s14   ;;  %s1355_s13 = sphi %s1397_s13, %s2293_s13   ;;  %s1351_s12 = sphi %s1395_s12, %s2292_s12  }
   0x6   : > { %s1420_s18 = sadd.s32 1, %s1363_s15   ;;  %s26_s19 = sadd.s32 1, %s1359_s14 }
   0x7   : > { %s23_s20 = ssub.s32 %s1363_s15, %s1420_s18  ;;  %p33_p0 = scmp.ne.s32.totalorder %s1359_s14, %s1355_s13 }
   0x8   : > { %p24_p1 = scmp.eq.s32.totalorder %s23_s20, 0  ;;  %p34_p2 = scmp.eq.s32.totalorder %s1363_s15, 0 }
   0x9   : > { %p39_p3 = scmp.ne.s32.totalorder %s1355_s13, %s1351_s12  ;;  %p40_p4 = scmp.eq.s32.totalorder %s1416_s16, 0 }
   0xa   : > { %s1432_s21 = scalar_select %p24_p1, %s1359_s14, %s26_s19  }
   0xb   : > { %p1434_p5 = por %p34_p2, %p33_p0  ;;  %p1438_p6 = por %p40_p4, %p39_p3 }
   0xc   : > { %p105_p7 = scmp.eq.s32.totalorder %s1416_s16, 1  ;;  %p111_p8 = scmp.eq.s32.totalorder %s1039_s17, 1 }
   0xd   : > { %p1041_p9 = scmp.ge.s32.totalorder %s1363_s15, 2  ;;  %p1202_p10 = scmp.lt.s32.totalorder %s1363_s15, 2 }
   0xe   : > { %p1445_p11 = por %p105_p7, %p33_p0  ;;  %p1449_p12 = por %p111_p8, %p39_p3 }
   0xf   : > { %s137_s26 = sand.u32 1, %s1359_s14   ;;  %s1188_s27 = sshll.u32 %s1363_s15, 4 }
  0x10   : > { %s1042_s28 = sshll.u32 %s137_s26, 6  ;;  %s146_s4 = scalar_lea.hbm %s2160_s0, %s1188_s27 }
  0x11   : > { %s147_s5 = sshll.u32 %s146_s4, 4  ;;  %s141_s6 = scalar_lea.vmem [#allocation2], %s1042_s28  ;;  %s148_s5 = int_to_ptr.hbm [resolvable:$true] %s147_s5 }
  0x12   : > { %s149_s7 = sshll.u32 %s141_s6, 4  ;;  %p1460_p13 = pnand %p1202_p10, %p1434_p5  ;;  %s150_s7 = int_to_ptr.vmem [resolvable:$true] %s149_s7 }
  0x13   : > { %p1045_p0 = scmp.ge.s32.totalorder %s1363_s15, 1  ;;  %s138_s9 = scalar_lea.sflag [#allocation3], %s137_s26 }
  0x14   : > { %s1267_s10 = sshra.s32 %s148_s5, 4  ;;  %p1271_p2 = pneg %p1460_p13  ;;  %s1268_s10 = int_to_ptr.hbm [resolvable:$true] %s1267_s10 }
  0x15   : > { %s1269_s11 = scalar_lea.hbm %s1268_s10, 64  ;;  %s1274_s20 = scalar_lea.hbm %s2160_s0, 128 }
  0x16   : > { %p1270_p1 = scmp.ne.s32.totalorder %s1268_s10, %s1269_s11  ;;  %p1275_p5 = scmp.lt.s32.totalorder %s1268_s10, %s2160_s0 }
  0x17   : > { %p1276_p7 = scmp.lt.s32.totalorder %s1274_s20, %s1269_s11 }
  0x18   : > { %p1272_p3 = pnand %p1271_p2, %p1270_p1 }
  0x19   : > { %p1277_p8 = por %p1276_p7, %p1275_p5 }
  0x1a   : > { %p1273_p4 = pneg %p1272_p3 }
  0x1c   : > { %p1278_p10 = pnand %p1277_p8, %p1273_p4 }
  0x1e   : > { %1281 = shalt.err (!%p1278_p10)
}
  0x1f   : > { %s1365_s26 = smov 512   ;;  %s1366_s28 = smov 256  }
  0x20   : > { %s1367_s29 = smov 16   ;;  %p157_p1 = scmp.lt.s32.totalorder %s1363_s15, 3 }
  0x21   : > { %1197 = dma.hbm_to_vmem [thread:$0]  (!%p1460_p13), %s148_s5, 1024, %s150_s7, %s138_s9, %s1365_s26, %s1366_s28, %s1367_s29  }
  0x22   : > { %p158_p2 = pnand %p1045_p0, %p157_p1 }
  0x23   : > { %s1479_s30 = sand.u32 (!%p158_p2), 1, %s1355_s13  }
  0x24   : > { %161 = sbr.rel (%p158_p2) target bundleno = 1328 (0x530), region = 32  ;;  %s1046_s4 = sshll.u32 (!%p158_p2), %s1479_s30, 6 }
  0x25   : > { %s164_s6 = scalar_lea.sflag (!%p158_p2), [#allocation3], %s1479_s30  ;;  %s1483_s10 = scalar_lea.vmem (!%p158_p2), [#allocation2], %s1046_s4 }
  0x29   : > { %1342 = dma.done.wait (%p1438_p6), %s164_s6, 1024  }
  0x2a   : > { %1344 = vsyncadd (%p1438_p6), %s164_s6, 4294966272  ;;  %v265_v0 = vlaneseq  ;;  %vm210_vm0 = vcmask 1040384   ;;  %v202_v8 = vld [vmem:[%s1483_s10 + $0x38] sm:$0x1]  ;;  %v200_v9 = vld [vmem:[%s1483_s10 + $0x28] sm:$0xff]  ;;  %v2190_v17 = vmov 0 }
  0x2b   : > { %1051 = vmatpush.msk.msra.mxu3 %vm210_vm0, %v202_v8  ;;  %v201_v11 = vld [vmem:[%s1483_s10 + $0x30] sm:$0x1]  ;;  %v198_v13 = vld [vmem:[%s1483_s10 + $0x18] sm:$0xff]  ;;  %v199_v14 = vld [vmem:[%s1483_s10 + $0x20] sm:$0xff]  ;;  %v1368_v20 = vmov 1.0   ;;  %vm2164_vm10 = vcmask 203776  }
  0x2c   : > { %v1489_v1 = vshrl.u32 %v265_v0, 7  ;;  %v1491_v2 = vand.u32 127, %v265_v0  ;;  %1048 = vmatpush.msk.msra.mxu0 %vm210_vm0, %v201_v11  ;;  %v197_v16 = vld [vmem:[%s1483_s10 + $0x10] sm:$0xff]  ;;  %v196_v19 = vld [vmem:[%s1483_s10 + $0x8] sm:$0xff]  ;;  %v193_v22 = vld [vmem:[%s2161_s1] sm:$0xff]  ;;  %v2192_v24 = vmov 0 }
  0x2d   : > { %253 = vmatpush.msra.mxu3 %v200_v9  ;;  %v195_v23 = vld [vmem:[%s1483_s10] sm:$0xff]  ;;  %v2196_v28 = vmov 0  ;;  %v2200_v32 = vmov 0  ;;  %v2202_v34 = vmov 0  ;;  %v2204_v36 = vmov 0  ;;  %v194_v40 = vld [vmem:[%s2161_s1 + $0x8] sm:$0xff] }
  0x2e   : > { %v304_v3 = vadd.s32 120, %v1489_v1  ;;  %v1495_v4 = vmul.u32 16, %v1491_v2  ;;  %v303_v5 = vadd.s32 112, %v1489_v1  ;;  %v320_v7 = vadd.s32 248, %v1489_v1  ;;  %230 = vmatpush.msra.mxu0 %v199_v14  ;;  %v263_v8 = vld [vmem:[%s2162_s2] sm:$0xff]  ;;  %s1047_s20 = sshll.u32 %s1479_s30, 5 }
  0x2f   : > { %v302_v10 = vadd.s32 104, %v1489_v1  ;;  %v319_v12 = vadd.s32 240, %v1489_v1  ;;  %v301_v15 = vadd.s32 96, %v1489_v1  ;;  %v318_v18 = vadd.s32 232, %v1489_v1  ;;  %254 = vmatpush.msra.mxu3 %v198_v13  ;;  %s2117_s22 = scalar_lea.vmem [#allocation5], %s1047_s20  ;;  %s1189_s27 = sshll.u32 %s1416_s16, 4 }
  0x30   : > { %v1499_v6 = vadd.s32 16, %v1495_v4  ;;  %vm337_vm1 = vcmp.ge.s32.totalorder %v304_v3, %v1495_v4  ;;  %vm336_vm3 = vcmp.ge.s32.totalorder %v303_v5, %v1495_v4  ;;  %vm353_vm6 = vcmp.ge.s32.totalorder %v320_v7, %v1495_v4  ;;  %231 = vmatpush.msra.mxu0 %v197_v16  ;;  %s962_s29 = scalar_lea.hbm %s2163_s3, %s1189_s27  ;;  %s963_s4 = sshll.u32 %s2117_s22, 4  ;;  %s964_s4 = int_to_ptr.vmem [resolvable:$true] %s963_s4 }
  0x31   : > { %vm335_vm8 = vcmp.ge.s32.totalorder %v302_v10, %v1495_v4  ;;  %v300_v21 = vadd.s32 88, %v1489_v1  ;;  %vm352_vm12 = vcmp.ge.s32.totalorder %v319_v12, %v1495_v4  ;;  %v317_v25 = vadd.s32 224, %v1489_v1  ;;  %255 = vmatpush.msra.mxu3 %v196_v19  ;;  %s965_s16 = sshll.u32 %s962_s29, 4  ;;  %s951_s6 = scalar_lea.sflag [#allocation4], %s1479_s30  ;;  %s966_s16 = int_to_ptr.hbm [resolvable:$true] %s965_s16 }
  0x32   : > { %vm370_vm2 = vcmp.lt.s32.totalorder %v304_v3, %v1499_v6  ;;  %vm369_vm4 = vcmp.lt.s32.totalorder %v303_v5, %v1499_v6  ;;  %vm386_vm7 = vcmp.lt.s32.totalorder %v320_v7, %v1499_v6  ;;  %vm368_vm9 = vcmp.lt.s32.totalorder %v302_v10, %v1499_v6  ;;  %1052 = vmatmul.msk.f32.vlgmr.msra.gmra.mxu3 %vm2164_vm10, %v193_v22  ;;  %v264_v10 = vld [vmem:[%s2162_s2 + $0x8] sm:$0xff]  ;;  %s1311_s10 = sshra.s32 %s966_s16, 4  ;;  %s1317_s8 = scalar_lea.hbm %s2163_s3, 64  ;;  %s1312_s10 = int_to_ptr.hbm [resolvable:$true] %s1311_s10 }
  0x33   : > { %vm1515_vm5 = vmand %vm337_vm1, %vm370_vm2  ;;  %vm385_vm13 = vcmp.lt.s32.totalorder %v319_v12, %v1499_v6  ;;  %vm334_vm15 = vcmp.ge.s32.totalorder %v301_v15, %v1495_v4  ;;  %vm367_vm0 = vcmp.lt.s32.totalorder %v301_v15, %v1499_v6  ;;  %v299_v27 = vadd.s32 80, %v1489_v1  ;;  %232 = vmatpush.msra.mxu0 %v195_v23  ;;  %s1313_s23 = scalar_lea.hbm %s1312_s10, 32  ;;  %p1318_p3 = scmp.lt.s32.totalorder %s1312_s10, %s2163_s3 }
  0x34   : > { %v2191_v17 = vsel %vm1515_vm5, 4294967295, %v2190_v17  ;;  %1093 = vmatpush.msk.msra.mxu2 %vm1515_vm5, %v1368_v20  ;;  %vm1537_vm11 = vmand %vm336_vm3, %vm369_vm4  ;;  %vm351_vm2 = vcmp.ge.s32.totalorder %v318_v18, %v1495_v4  ;;  %vm384_vm3 = vcmp.lt.s32.totalorder %v318_v18, %v1499_v6  ;;  %v316_v29 = vadd.s32 216, %v1489_v1  ;;  %1049 = vmatmul.msk.f32.vlgmr.msra.gmra.mxu0 %vm2164_vm10, %v193_v22  ;;  %p1314_p6 = scmp.ne.s32.totalorder %s1312_s10, %s1313_s23  ;;  %p1319_p4 = scmp.lt.s32.totalorder %s1317_s8, %s1313_s23 }
  0x35   : > { %v2193_v24 = vsel %vm1537_vm11, 4294967295, %v2192_v24  ;;  %vm1548_vm14 = vmand %vm353_vm6, %vm386_vm7  ;;  %vm333_vm6 = vcmp.ge.s32.totalorder %v300_v21, %v1495_v4  ;;  %vm366_vm7 = vcmp.lt.s32.totalorder %v300_v21, %v1499_v6  ;;  %v298_v31 = vadd.s32 72, %v1489_v1 }
  0x36   : > { %1094 = vmatpush.msk.msra.mxu2 %vm1537_vm11, %v1368_v20  ;;  %vm1562_vm1 = vmand %vm335_vm8, %vm368_vm9  ;;  %1109 = vmatpush.msk.msrb.mxu3 %vm1548_vm14, %v1368_v20  ;;  %vm350_vm9 = vcmp.ge.s32.totalorder %v317_v25, %v1495_v4  ;;  %v315_v33 = vadd.s32 208, %v1489_v1  ;;  %v297_v35 = vadd.s32 64, %v1489_v1  ;;  %v314_v37 = vadd.s32 200, %v1489_v1  ;;  %p1315_p13 = pnand %p1314_p6, %p1445_p11  ;;  %p1320_p5 = por %p1319_p4, %p1318_p3 }
  0x37   : > { %v2197_v28 = vsel %vm1562_vm1, 4294967295, %v2196_v28  ;;  %vm1574_vm4 = vmand %vm352_vm12, %vm385_vm13  ;;  %vm383_vm12 = vcmp.lt.s32.totalorder %v317_v25, %v1499_v6  ;;  %v2206_v38 = vmov 0  ;;  %v296_v39 = vadd.s32 56, %v1489_v1 }
  0x38   : > { %vm1589_vm8 = vmand %vm334_vm15, %vm367_vm0  ;;  %1095 = vmatpush.msk.msra.mxu2 %vm1562_vm1, %v1368_v20  ;;  %vm365_vm0 = vcmp.lt.s32.totalorder %v299_v27, %v1499_v6  ;;  %1110 = vmatpush.msk.msrb.mxu3 %vm1574_vm4, %v1368_v20  ;;  %v2209_v41 = vmov 0  ;;  %vm381_vm1 = vcmp.lt.s32.totalorder %v315_v33, %v1499_v6  ;;  %v313_v42 = vadd.s32 192, %v1489_v1  ;;  %p1316_p0 = pneg %p1315_p13 }
  0x39   : > { %v2201_v32 = vsel %vm1589_vm8, 4294967295, %v2200_v32  ;;  %vm1603_vm13 = vmand %vm351_vm2, %vm384_vm3  ;;  %vm349_vm2 = vcmp.ge.s32.totalorder %v316_v29, %v1495_v4  ;;  %vm382_vm3 = vcmp.lt.s32.totalorder %v316_v29, %v1499_v6  ;;  %v2211_v43 = vmov 0 }
  0x3a   : > { %v2203_v34 = vsel %vm1603_vm13, 4294967295, %v2202_v34  ;;  %vm1615_vm10 = vmand %vm333_vm6, %vm366_vm7  ;;  %1096 = vmatpush.msk.msra.mxu2 %vm1589_vm8, %v1368_v20  ;;  %vm364_vm6 = vcmp.lt.s32.totalorder %v298_v31, %v1499_v6  ;;  %1111 = vmatpush.msk.msrb.mxu3 %vm1603_vm13, %v1368_v20  ;;  %vm2208_vm7 = vcmp.ge.s32.totalorder %v299_v27, %v1495_v4  ;;  %v295_v44 = vadd.s32 48, %v1489_v1  ;;  %p1321_p7 = pnand %p1320_p5, %p1316_p0 }
  0x3b   : > { %v2205_v36 = vsel %vm1615_vm10, 4294967295, %v2204_v36  ;;  %vm1625_vm15 = vmand %vm350_vm9, %vm383_vm12  ;;  %vm2213_vm12 = vcmp.ge.s32.totalorder %v298_v31, %v1495_v4  ;;  %v2214_v45 = vmov 0  ;;  %v312_v46 = vadd.s32 184, %v1489_v1 }
  0x3c   : > { %v2207_v38 = vsel %vm1625_vm15, 4294967295, %v2206_v38  ;;  %vm1640_vm9 = vmand %vm2208_vm7, %vm365_vm0  ;;  %1097 = vmatpush.msk.msra.mxu2 %vm1615_vm10, %v1368_v20  ;;  %1112 = vmatpush.msk.msrb.mxu3 %vm1625_vm15, %v1368_v20  ;;  %vm2216_vm0 = vcmask 203776   ;;  %vm2217_vm7 = vcmp.ge.s32.totalorder %v315_v33, %v1495_v4  ;;  %v2218_v47 = vmov 0 }
  0x3d   : > { %v2210_v41 = vsel %vm1640_vm9, 4294967295, %v2209_v41  ;;  %vm1652_vm8 = vmand %vm349_vm2, %vm382_vm3  ;;  %1053 = vmatmul.msk.f32.gmra.mxu3 %vm2216_vm0, %v194_v40  ;;  %v294_v48 = vadd.s32 40, %v1489_v1  ;;  %vm2222_vm3 = vcmp.ge.s32.totalorder %v297_v35, %v1495_v4  ;;  %v2223_v49 = vmov 0 }
  0x3e   : > { %v2212_v43 = vsel %vm1652_vm8, 4294967295, %v2211_v43  ;;  %vm1664_vm11 = vmand %vm2213_vm12, %vm364_vm6  ;;  %1098 = vmatpush.msk.msra.mxu2 %vm1640_vm9, %v1368_v20  ;;  %vm362_vm12 = vcmp.lt.s32.totalorder %v296_v39, %v1499_v6  ;;  %1113 = vmatpush.msk.msrb.mxu3 %vm1652_vm8, %v1368_v20  ;;  %vm379_vm6 = vcmp.lt.s32.totalorder %v313_v42, %v1499_v6  ;;  %v311_v50 = vadd.s32 176, %v1489_v1 }
  0x3f   : > { %v2215_v45 = vsel %vm1664_vm11, 4294967295, %v2214_v45  ;;  %vm1677_vm10 = vmand %vm2217_vm7, %vm381_vm1  ;;  %vm346_vm7 = vcmp.ge.s32.totalorder %v313_v42, %v1495_v4  ;;  %vm2226_vm9 = vcmp.ge.s32.totalorder %v314_v37, %v1495_v4  ;;  %v2227_v51 = vmov 0 }
  0x40   : > { %v2219_v47 = vsel %vm1677_vm10, 4294967295, %v2218_v47  ;;  %vm2220_vm2 = vmmov %vm2216_vm0  ;;  %vm2221_vm0 = vcmp.lt.s32.totalorder %v297_v35, %v1499_v6  ;;  %1099 = vmatpush.msk.msra.mxu2 %vm1664_vm11, %v1368_v20  ;;  %v293_v52 = vadd.s32 32, %v1489_v1  ;;  %1114 = vmatpush.msk.msrb.mxu3 %vm1677_vm10, %v1368_v20  ;;  %vm2229_vm11 = vcmp.ge.s32.totalorder %v296_v39, %v1495_v4 }
  0x41   : > { %1050 = vmatmul.msk.f32.gmra.mxu0 %vm2220_vm2, %v194_v40  ;;  %vm1692_vm1 = vmand %vm2222_vm3, %vm2221_vm0  ;;  %vm2225_vm2 = vcmp.lt.s32.totalorder %v314_v37, %v1499_v6  ;;  %vm328_vm3 = vcmp.ge.s32.totalorder %v295_v44, %v1495_v4  ;;  %vm361_vm0 = vcmp.lt.s32.totalorder %v295_v44, %v1499_v6  ;;  %v2230_v53 = vmov 0 }
  0x42   : > { %v2224_v49 = vsel %vm1692_vm1, 4294967295, %v2223_v49  ;;  %vm1706_vm5 = vmand %vm2226_vm9, %vm2225_vm2  ;;  %vm345_vm9 = vcmp.ge.s32.totalorder %v312_v46, %v1495_v4  ;;  %vm378_vm2 = vcmp.lt.s32.totalorder %v312_v46, %v1499_v6  ;;  %v310_v54 = vadd.s32 168, %v1489_v1  ;;  %1100 = vmatpush.msk.msra.mxu2 %vm1692_vm1, %v1368_v20 }
  0x43   : > { %v2228_v51 = vsel %vm1706_vm5, 4294967295, %v2227_v51  ;;  %vm1718_vm8 = vmand %vm2229_vm11, %vm362_vm12  ;;  %v2232_v55 = vmov 0  ;;  %vm327_vm10 = vcmp.ge.s32.totalorder %v294_v48, %v1495_v4  ;;  %vm360_vm11 = vcmp.lt.s32.totalorder %v294_v48, %v1499_v6  ;;  %1115 = vmatpush.msk.msrb.mxu3 %vm1706_vm5, %v1368_v20 }
  0x44   : > { %v2231_v53 = vsel %vm1718_vm8, 4294967295, %v2230_v53  ;;  %vm1728_vm15 = vmand %vm346_vm7, %vm379_vm6  ;;  %v292_v56 = vadd.s32 24, %v1489_v1  ;;  %v2234_v57 = vmov 0  ;;  %vm344_vm1 = vcmp.ge.s32.totalorder %v311_v50, %v1495_v4  ;;  %1101 = vmatpush.msk.msra.mxu2 %vm1718_vm8, %v1368_v20 }
  0x45   : > { %v2233_v55 = vsel %vm1728_vm15, 4294967295, %v2232_v55  ;;  %vm1738_vm12 = vmand %vm328_vm3, %vm361_vm0  ;;  %vm377_vm6 = vcmp.lt.s32.totalorder %v311_v50, %v1499_v6  ;;  %v309_v58 = vadd.s32 160, %v1489_v1  ;;  %v2236_v59 = vmov 0  ;;  %1116 = vmatpush.msk.msrb.mxu3 %vm1728_vm15, %v1368_v20 }
  0x46   : > { %v2235_v57 = vsel %vm1738_vm12, 4294967295, %v2234_v57  ;;  %vm1748_vm7 = vmand %vm345_vm9, %vm378_vm2  ;;  %vm326_vm5 = vcmp.ge.s32.totalorder %v293_v52, %v1495_v4  ;;  %vm359_vm3 = vcmp.lt.s32.totalorder %v293_v52, %v1499_v6  ;;  %v291_v60 = vadd.s32 16, %v1489_v1  ;;  %1102 = vmatpush.msk.msra.mxu2 %vm1738_vm12, %v1368_v20 }
  0x47   : > { %v2237_v59 = vsel %vm1748_vm7, 4294967295, %v2236_v59  ;;  %vm1758_vm0 = vmand %vm327_vm10, %vm360_vm11  ;;  %v2238_v61 = vmov 0  ;;  %vm343_vm8 = vcmp.ge.s32.totalorder %v310_v54, %v1495_v4  ;;  %vm376_vm9 = vcmp.lt.s32.totalorder %v310_v54, %v1499_v6  ;;  %1117 = vmatpush.msk.msrb.mxu3 %vm1748_vm7, %v1368_v20 }
  0x48   : > { %v2239_v61 = vsel %vm1758_vm0, 4294967295, %v2238_v61  ;;  %v308_v62 = vadd.s32 152, %v1489_v1  ;;  %vm1768_vm2 = vmand %vm344_vm1, %vm377_vm6  ;;  %vm325_vm15 = vcmp.ge.s32.totalorder %v292_v56, %v1495_v4  ;;  %vm358_vm10 = vcmp.lt.s32.totalorder %v292_v56, %v1499_v6  ;;  %1103 = vmatpush.msk.msra.mxu2 %vm1758_vm0, %v1368_v20 }
  0x49   : > { %v1775_v0 = vadd.s32 8, %v1489_v1  ;;  %vm1780_vm11 = vmand %vm326_vm5, %vm359_vm3  ;;  %v2242_v3 = vmov 0  ;;  %vm342_vm1 = vcmp.ge.s32.totalorder %v309_v58, %v1495_v4  ;;  %vm375_vm6 = vcmp.lt.s32.totalorder %v309_v58, %v1499_v6  ;;  %1118 = vmatpush.msk.msrb.mxu3 %vm1768_vm2, %v1368_v20 }
  0x4a   : > { %v2243_v3 = vsel %vm1780_vm11, 4294967295, %v2242_v3  ;;  %v307_v5 = vadd.s32 144, %v1489_v1  ;;  %vm1790_vm12 = vmand %vm343_vm8, %vm376_vm9  ;;  %v2244_v7 = vmov 0  ;;  %vm324_vm7 = vcmp.ge.s32.totalorder %v291_v60, %v1495_v4  ;;  %1104 = vmatpush.msk.msra.mxu2 %vm1780_vm11, %v1368_v20 }
  0x4b   : > { %v2245_v7 = vsel %vm1790_vm12, 4294967295, %v2244_v7  ;;  %vm357_vm5 = vcmp.lt.s32.totalorder %v291_v60, %v1499_v6  ;;  %vm1799_vm3 = vmand %vm325_vm15, %vm358_vm10  ;;  %vm341_vm13 = vcmp.ge.s32.totalorder %v308_v62, %v1495_v4  ;;  %vm374_vm0 = vcmp.lt.s32.totalorder %v308_v62, %v1499_v6  ;;  %1119 = vmatpush.msk.msrb.mxu3 %vm1790_vm12, %v1368_v20 }
  0x4c   : > { %v306_v9 = vadd.s32 136, %v1489_v1  ;;  %vm1809_vm8 = vmand %vm342_vm1, %vm375_vm6  ;;  %vm323_vm15 = vcmp.ge.s32.totalorder %v1775_v0, %v1495_v4  ;;  %vm356_vm9 = vcmp.lt.s32.totalorder %v1775_v0, %v1499_v6  ;;  %vm340_vm11 = vcmp.ge.s32.totalorder %v307_v5, %v1495_v4  ;;  %1105 = vmatpush.msk.msra.mxu2 %vm1799_vm3, %v1368_v20 }
  0x4d   : > { %vm1820_vm10 = vmand %vm324_vm7, %vm357_vm5  ;;  %vm373_vm1 = vcmp.lt.s32.totalorder %v307_v5, %v1499_v6  ;;  %1120 = vmatpush.msk.msrb.mxu3 %vm1809_vm8, %v1368_v20  ;;  %v305_v16 = vadd.s32 128, %v1489_v1  ;;  %v271_v25 = vadd.s32 1, %v1489_v1  ;;  %v269_v27 = vmul.u32 2, %v1489_v1 }
  0x4e   : > { %vm1829_vm6 = vmand %vm341_vm13, %vm374_vm0  ;;  %vm339_vm5 = vcmp.ge.s32.totalorder %v306_v9, %v1495_v4  ;;  %vm372_vm12 = vcmp.lt.s32.totalorder %v306_v9, %v1499_v6  ;;  %1106 = vmatpush.msk.msra.mxu2 %vm1820_vm10, %v1368_v20  ;;  %v1369_v35 = vmov 0.0   ;;  %v281_v42 = vadd.s32 1, %v1491_v2 }
  0x4f   : > { %vm1836_vm7 = vmand %vm323_vm15, %vm356_vm9  ;;  %1121 = vmatpush.msk.msrb.mxu3 %vm1829_vm6, %v1368_v20  ;;  %vm355_vm15 = vcmp.lt.s32.totalorder %v1489_v1, %v1499_v6  ;;  %vm371_vm9 = vcmp.lt.s32.totalorder %v305_v16, %v1499_v6  ;;  %v272_v29 = vmul.u32 2, %v271_v25  ;;  %v483_v46 = vadd.s32 128, %v1491_v2 }
  0x50   : > { %vm1845_vm13 = vmand %vm340_vm11, %vm373_vm1  ;;  %1107 = vmatpush.msk.msra.mxu2 %vm1836_vm7, %v1368_v20  ;;  %vm322_vm11 = vcmp.ge.s32.totalorder %v1489_v1, %v1495_v4  ;;  %v282_v44 = vmul.u32 2, %v281_v42  ;;  %v484_v54 = vmul.u32 16, %v1489_v1 }
  0x51   : > { %vm1855_vm0 = vmand %vm339_vm5, %vm372_vm12  ;;  %1122 = vmatpush.msk.msrb.mxu3 %vm1845_vm13, %v1368_v20  ;;  %vm338_vm12 = vcmp.ge.s32.totalorder %v305_v16, %v1495_v4 }
  0x52   : > { %vm1872_vm1 = vmand %vm322_vm11, %vm355_vm15  ;;  %vm2264_vm11 = vnez %v2203_v34  ;;  %vm2265_vm15 = vnez %v2207_v38  ;;  %v485_v38 = vmul.u32 16, %v1775_v0 }
  0x53   : > { %1123 = vmatpush.msk.msrb.mxu3 %vm1855_vm0, %v1368_v20  ;;  %1108 = vmatpush.msk.msra.mxu2 %vm1872_vm1, %v1368_v20  ;;  %vm1879_vm5 = vmand %vm338_vm12, %vm371_vm9  ;;  %vm2266_vm12 = vnez %v2212_v43  ;;  %vm2267_vm9 = vnez %v2219_v47  ;;  %v278_v43 = vmul.u32 2, %v1491_v2 }
  0x54   : > { %v491_v39 = vadd.s32 16, %v485_v38 }
  0x55   : > { %1124 = vmatpush.msk.msrb.mxu3 %vm1879_vm5, %v1368_v20  ;;  %1152 = vmatpush.msk.msrb.mxu2 %vm1548_vm14, %v1368_v20  ;;  %vm2268_vm14 = vnez %v2228_v51 }
  0x57   : > { %1153 = vmatpush.msk.msrb.mxu2 %vm1574_vm4, %v1368_v20  ;;  %vm2269_vm4 = vnez %v2233_v55  ;;  %v490_v55 = vadd.s32 16, %v484_v54 }
  0x59   : > { %1154 = vmatpush.msk.msrb.mxu2 %vm2264_vm11, %v1368_v20  ;;  %vm2270_vm11 = vnez %v2237_v59 }
  0x5b   : > { %1155 = vmatpush.msk.msrb.mxu2 %vm2265_vm15, %v1368_v20  ;;  %vm2271_vm15 = vnez %v2245_v7  ;;  %v1370_v7 = vmov 0  }
  0x5c   : > { %1246 = vset.pattern.permute.xlu0 %v1370_v7 }
  0x5d   : > { %1156 = vmatpush.msk.msrb.mxu2 %vm2266_vm12, %v1368_v20  ;;  %772 = vperm.xlu0 %1246, %v263_v8  }
  0x5f   : > { %1157 = vmatpush.msk.msrb.mxu2 %vm2267_vm9, %v1368_v20  ;;  %vm279_vm9 = vcmp.ge.s32.totalorder %v1489_v1, %v278_v43 }
  0x61   : > { %1158 = vmatpush.msk.msrb.mxu2 %vm2268_vm14, %v1368_v20  ;;  %vm283_vm14 = vcmp.lt.s32.totalorder %v1489_v1, %v282_v44 }
  0x63   : > { %1159 = vmatpush.msk.msrb.mxu2 %vm2269_vm4, %v1368_v20  ;;  %vm285_vm4 = vmand %vm279_vm9, %vm283_vm14  ;;  %vm486_vm9 = vcmp.ge.s32.totalorder %v1491_v2, %v484_v54  ;;  %vm492_vm14 = vcmp.lt.s32.totalorder %v1491_v2, %v490_v55 }
  0x64   : > { %v1969_v50 = vsel %vm285_vm4, 1.0, %v1369_v35  ;;  %vm487_vm4 = vcmp.ge.s32.totalorder %v483_v46, %v484_v54 }
  0x65   : > { %1160 = vmatpush.msk.msrb.mxu2 %vm2270_vm11, %v1368_v20  ;;  %vm489_vm11 = vcmp.ge.s32.totalorder %v483_v46, %v485_v38  ;;  %777 = vperm.xlu0 %1246, %v264_v10  }
  0x67   : > { %1161 = vmatpush.msk.msrb.mxu2 %vm1768_vm2, %v1368_v20  ;;  %vm270_vm2 = vcmp.ge.s32.totalorder %v1491_v2, %v269_v27 }
  0x69   : > { %1162 = vmatpush.msk.msrb.mxu2 %vm2271_vm15, %v1368_v20  ;;  %vm495_vm15 = vcmp.lt.s32.totalorder %v483_v46, %v491_v39 }
  0x6b   : > { %1163 = vmatpush.msk.msrb.mxu2 %vm1809_vm8, %v1368_v20  ;;  %vm273_vm8 = vcmp.lt.s32.totalorder %v1491_v2, %v272_v29 }
  0x6d   : > { %1164 = vmatpush.msk.msrb.mxu2 %vm1829_vm6, %v1368_v20  ;;  %vm274_vm6 = vmand %vm270_vm2, %vm273_vm8  ;;  %vm579_vm2 = vcmask 64512  }
  0x6e   : > { %v1950_v37 = vsel %vm274_vm6, 1.0, %v1369_v35  ;;  %vm1971_vm8 = vmand %vm489_vm11, %vm495_vm15  ;;  %vm280_vm6 = vcmp.ge.s32.totalorder %v1775_v0, %v278_v43  ;;  %vm493_vm11 = vcmp.lt.s32.totalorder %v483_v46, %v490_v55 }
  0x6f   : > { %1165 = vmatpush.msk.msrb.mxu2 %vm1845_vm13, %v1368_v20  ;;  %vm554_vm13 = vcmask 130048   ;;  %vm1989_vm15 = vmand %vm486_vm9, %vm492_vm14  ;;  %vm2282_vm9 = vnez %v2197_v28  ;;  %vm2283_vm14 = vnez %v2201_v32 }
  0x71   : > { %1166 = vmatpush.msk.msrb.mxu2 %vm1855_vm0, %v1368_v20  ;;  %vm488_vm0 = vcmp.ge.s32.totalorder %v1491_v2, %v485_v38 }
  0x73   : > { %1167 = vmatpush.msk.msrb.mxu2 %vm1879_vm5, %v1368_v20  ;;  %vm494_vm5 = vcmp.lt.s32.totalorder %v1491_v2, %v491_v39 }
  0x74   : > { %vm1957_vm12 = vmand %vm488_vm0, %vm494_vm5  ;;  %vm284_vm0 = vcmp.lt.s32.totalorder %v1775_v0, %v282_v44 }
  0x75   : > { %1128 = vmatpush.msk.msrb.mxu0 %vm1957_vm12, %v1368_v20  ;;  %vm286_vm5 = vmand %vm280_vm6, %vm284_vm0  ;;  %vm2280_vm0 = vnez %v2191_v17 }
  0x76   : > { %v1982_v52 = vsel %vm286_vm5, 1.0, %v1369_v35  ;;  %vm1996_vm6 = vmand %vm487_vm4, %vm493_vm11  ;;  %vm2281_vm5 = vnez %v2193_v24  ;;  %vm2284_vm4 = vnez %v2205_v36  ;;  %vm2285_vm11 = vnez %v2210_v41 }
  0x77   : > { %1129 = vmatpush.msk.msrb.mxu0 %vm1989_vm15, %v1368_v20 }
  0x79   : > { %1136 = vmatpush.msk.msra.mxu0 %vm2280_vm0, %v1368_v20  ;;  %vm2286_vm0 = vnez %v2215_v45 }
  0x7b   : > { %1137 = vmatpush.msk.msra.mxu0 %vm2281_vm5, %v1368_v20  ;;  %vm2287_vm5 = vnez %v2224_v49 }
  0x7d   : > { %1138 = vmatpush.msk.msra.mxu0 %vm2282_vm9, %v1368_v20  ;;  %vm2288_vm9 = vnez %v2231_v53 }
  0x7f   : > { %1139 = vmatpush.msk.msra.mxu0 %vm2283_vm14, %v1368_v20  ;;  %vm2289_vm14 = vnez %v2235_v57 }
  0x81   : > { %1140 = vmatpush.msk.msra.mxu0 %vm2284_vm4, %v1368_v20  ;;  %vm2290_vm4 = vnez %v2239_v61 }
  0x83   : > { %1141 = vmatpush.msk.msra.mxu0 %vm2285_vm11, %v1368_v20  ;;  %vm2291_vm11 = vnez %v2243_v3 }
  0x85   : > { %1142 = vmatpush.msk.msra.mxu0 %vm2286_vm0, %v1368_v20 }
  0x87   : > { %1143 = vmatpush.msk.msra.mxu0 %vm2287_vm5, %v1368_v20 }
  0x89   : > { %1144 = vmatpush.msk.msra.mxu0 %vm2288_vm9, %v1368_v20 }
  0x8b   : > { %1145 = vmatpush.msk.msra.mxu0 %vm2289_vm14, %v1368_v20 }
  0x8d   : > { %1146 = vmatpush.msk.msra.mxu0 %vm2290_vm4, %v1368_v20 }
  0x8f   : > { %1147 = vmatpush.msk.msra.mxu0 %vm2291_vm11, %v1368_v20 }
  0x91   : > { %1148 = vmatpush.msk.msra.mxu0 %vm1799_vm3, %v1368_v20 }
  0x93   : > { %1149 = vmatpush.msk.msra.mxu0 %vm1820_vm10, %v1368_v20 }
  0x95   : > { %1150 = vmatpush.msk.msra.mxu0 %vm1836_vm7, %v1368_v20 }
  0x97   : > { %1151 = vmatpush.msk.msra.mxu0 %vm1872_vm1, %v1368_v20 }
  0xb1   : > { %v1925_v4 = vpop.f32.mrf.mxu0 }
  0xb2   : > { %524 = vmatmul.f32.vlgmr.msra.gmra.mxu2 %v1925_v4 }
  0xb5   : > { %v1937_v6 = vpop.f32.mrf.mxu3 }
  0xb6   : > { %547 = vmatmul.f32.vlgmr.msrb.gmra.mxu3 %v1937_v6 }
  0xbe   : > { %v1940_v21 = vpop.f32.mrf.mxu0 }
  0xbf   : > { %527 = vmatmul.f32.gmra.mxu2 %v1940_v21 }
  0xc0   : > { %v1943_v22 = vpop.f32.mrf.mxu3 }
  0xc1   : > { %550 = vmatmul.f32.gmra.mxu3 %v1943_v22 }
 0x135   : > { %v525_v23 = vpop.f32.mrf.mxu2 }
 0x139   : > { %v548_v26 = vpop.f32.mrf.mxu3 }
 0x13a   : > { %v549_v34 = vadd.f32 %v548_v26, %v525_v23 }
 0x142   : > { %v528_v30 = vpop.f32.mrf.mxu2 }
 0x144   : > { %v551_v31 = vpop.f32.mrf.mxu3 }
 0x145   : > { %v552_v33 = vadd.f32 %v551_v31, %v528_v30 }
 0x147   : > { %572 = vmatpush.msra.mxu1 %v552_v33 }
 0x149   : > { %573 = vmatpush.msra.mxu1 %v549_v34 }
 0x14a   : > { %1125 = vmatmul.msk.f32.vlgmr.msra.gmra.mxu1 %vm554_vm13, %v1950_v37 }
 0x1c7   : > { %v575_v47 = vpop.f32.mrf.mxu1 }
 0x1c8   : > { %v578_v48 = vmul.f32 0.03125, %v575_v47 }
 0x1ca   : > { %601 = vmatpush.msrb.mxu1 %v578_v48 }
 0x1cb   : > { %1126 = vmatmul.msk.f32.vlgmr.msrb.gmra.mxu1 %vm579_vm2, %v1969_v50 }
 0x1cc   : > { %1132 = vmatpush.msk.msra.mxu1 %vm1971_vm8, %v1368_v20 }
 0x1ce   : > { %1133 = vmatpush.msk.msra.mxu1 %vm1996_vm6, %v1368_v20 }
 0x1d3   : > { %1127 = vmatmul.msk.f32.gmra.mxu1 %vm579_vm2, %v1982_v52 }
 0x248   : > { %v603_v1 = vpop.f32.mrf.mxu1 }
 0x249   : > { %1130 = vmatmul.msk.f32.vlgmr.msrb.gmra.mxu0 %vm554_vm13, %v603_v1  ;;  %1134 = vmatmul.msk.f32.vlgmr.msra.gmra.mxu1 %vm554_vm13, %v603_v1 }
 0x250   : > { %v606_v2 = vpop.f32.mrf.mxu1 }
 0x251   : > { %1131 = vmatmul.msk.f32.gmra.mxu0 %vm554_vm13, %v606_v2  ;;  %1135 = vmatmul.msk.f32.gmra.mxu1 %vm554_vm13, %v606_v2 }
 0x2c6   : > { %v632_v17 = vpop.f32.mrf.mxu0  ;;  %v655_v24 = vpop.f32.mrf.mxu1 }
 0x2c7   : > { %v2056_v28 = vsub.f32 %v1925_v4, %v632_v17  ;;  %v2059_v32 = vsub.f32 %v1937_v6, %v655_v24  ;;  %v1371_v6 = vmov 1  }
 0x2c8   : > { %1247 = vset.pattern.permute.xlu1 %v1371_v6  ;;  %1248 = vset.pattern.permute.xlu0 %v1371_v6 }
 0x2c9   : > { %v665_v36 = vmul.f32 %v2056_v28, %v2056_v28  ;;  %v666_v41 = vmul.f32 %v2059_v32, %v2059_v32  ;;  %839 = vperm.xlu1 %1247, %v263_v8  }
 0x2cb   : > { %685 = vmatmul.f32.vlgmr.msra.gmra.mxu0 %v665_v36  ;;  %708 = vmatmul.f32.vlgmr.msrb.gmra.mxu2 %v666_v41 }
 0x2ce   : > { %v635_v45 = vpop.f32.mrf.mxu0  ;;  %v658_v49 = vpop.f32.mrf.mxu1 }
 0x2cf   : > { %v2066_v53 = vsub.f32 %v1940_v21, %v635_v45  ;;  %v2069_v57 = vsub.f32 %v1943_v22, %v658_v49  ;;  %v773_v21 = vpop.permute.xlu0 %772 }
 0x2d1   : > { %v667_v59 = vmul.f32 %v2066_v53, %v2066_v53  ;;  %v668_v60 = vmul.f32 %v2069_v57, %v2069_v57  ;;  %843 = vperm.xlu1 %1247, %v264_v10  }
 0x2d3   : > { %688 = vmatmul.f32.gmra.mxu0 %v667_v59  ;;  %711 = vmatmul.f32.gmra.mxu2 %v668_v60 }
 0x2d7   : > { %v778_v25 = vpop.permute.xlu0 %777 }
 0x33b   : > { %v840_v29 = vpop.permute.xlu1 %839 }
 0x343   : > { %v844_v42 = vpop.permute.xlu1 %843 }
 0x348   : > { %v686_v61 = vpop.f32.mrf.mxu0 }
 0x34e   : > { %v709_v62 = vpop.f32.mrf.mxu2 }
 0x34f   : > { %v710_v5 = vadd.f32 %v709_v62, %v686_v61 }
 0x350   : > { %v689_v63 = vpop.f32.mrf.mxu0 }
 0x356   : > { %v712_v0 = vpop.f32.mrf.mxu2 }
 0x357   : > { %v713_v3 = vadd.f32 %v712_v0, %v689_v63 }
 0x359   : > { %729 = vmatpush.msra.mxu3 %v713_v3 }
 0x35b   : > { %730 = vmatpush.msra.mxu3 %v710_v5 }
 0x35c   : > { %1168 = vmatmul.msk.f32.vlgmr.msra.gmra.mxu3 %vm554_vm13, %v1950_v37 }
 0x35d   : > { %1171 = vmatpush.msk.msrb.mxu3 %vm1957_vm12, %v1368_v20 }
 0x35f   : > { %1172 = vmatpush.msk.msrb.mxu3 %vm1989_vm15, %v1368_v20 }
 0x3df   : > { %v732_v9 = vpop.f32.mrf.mxu3 }
 0x3e0   : > { %v735_v11 = vmul.f32 0.03125, %v732_v9 }
 0x3e2   : > { %v736_v12 = vadd.f32 1e-05, %v735_v11 }
 0x3e4   : > { %1249 = vrsqrt.f32 %v736_v12  ;;  %vm743_vm10 = vweird.f32 %v736_v12 }
 0x3ea   : > { %v1250_v13 = vpop.eup %1249 }
 0x3eb   : > { %v738_v14 = vmul.f32 %v1250_v13, %v736_v12  ;;  %vm744_vm3 = vweird.f32 %v1250_v13 }
 0x3ec   : > { %vm745_vm7 = vmor %vm743_vm10, %vm744_vm3 }
 0x3ed   : > { %v739_v15 = vmul.f32 %v1250_v13, %v738_v14 }
 0x3ef   : > { %v740_v16 = vmul.f32 0.5, %v739_v15 }
 0x3f1   : > { %v741_v18 = vsub.f32 1.5, %v740_v16 }
 0x3f3   : > { %v742_v19 = vmul.f32 %v1250_v13, %v741_v18 }
 0x3f5   : > { %v746_v4 = vsel %vm745_vm7, %v1250_v13, %v742_v19 }
 0x3f6   : > { %762 = vmatpush.msrb.mxu1 %v746_v4 }
 0x3f7   : > { %1169 = vmatmul.msk.f32.vlgmr.msrb.gmra.mxu1 %vm579_vm2, %v1969_v50 }
 0x3f8   : > { %1175 = vmatpush.msk.msra.mxu1 %vm1971_vm8, %v1368_v20 }
 0x3fa   : > { %1176 = vmatpush.msk.msra.mxu1 %vm1996_vm6, %v1368_v20 }
 0x3ff   : > { %1170 = vmatmul.msk.f32.gmra.mxu1 %vm579_vm2, %v1982_v52 }
 0x474   : > { %v764_v22 = vpop.f32.mrf.mxu1 }
 0x475   : > { %v780_v23 = vmul.f32 %v773_v21, %v764_v22 }
 0x477   : > { %1173 = vmatmul.msk.f32.vlgmr.msrb.gmra.mxu3 %vm554_vm13, %v780_v23  ;;  %1177 = vmatmul.msk.f32.vlgmr.msra.gmra.mxu1 %vm554_vm13, %v780_v23 }
 0x47c   : > { %v767_v26 = vpop.f32.mrf.mxu1 }
 0x47d   : > { %v781_v27 = vmul.f32 %v778_v25, %v767_v26 }
 0x47f   : > { %1174 = vmatmul.msk.f32.gmra.mxu3 %vm554_vm13, %v781_v27  ;;  %1178 = vmatmul.msk.f32.gmra.mxu1 %vm554_vm13, %v781_v27 }
 0x4f4   : > { %v828_v20 = vpop.f32.mrf.mxu1 }
 0x4f5   : > { %v835_v30 = vmul.f32 %v828_v20, %v2059_v32 }
 0x4f7   : > { %v847_v31 = vadd.f32 %v840_v29, %v835_v30 }
 0x4f9   : > { %v851_v33 = vmin.f32 %v847_v31, 20.0 }
 0x4fa   : > { %v805_v34 = vpop.f32.mrf.mxu3 }
 0x4fb   : > { %v856_v35 = vmul.f32 1.442695, %v851_v33  ;;  %v834_v37 = vmul.f32 %v805_v34, %v2056_v28 }
 0x4fc   : > { %v831_v38 = vpop.f32.mrf.mxu1 }
 0x4fd   : > { %1251 = vpow2.f32 %v856_v35  ;;  %v2105_v39 = vadd.f32 %v840_v29, %v834_v37  ;;  %v837_v40 = vmul.f32 %v831_v38, %v2069_v57 }
 0x4ff   : > { %v850_v43 = vmin.f32 %v2105_v39, 20.0  ;;  %v2109_v44 = vadd.f32 %v844_v42, %v837_v40 }
 0x501   : > { %v854_v46 = vmul.f32 1.442695, %v850_v43  ;;  %v853_v47 = vmin.f32 %v2109_v44, 20.0 }
 0x502   : > { %v808_v48 = vpop.f32.mrf.mxu3 }
 0x503   : > { %v1252_v50 = vpop.eup %1251  ;;  %1253 = vpow2.f32 %v854_v46  ;;  %v860_v51 = vmul.f32 1.442695, %v853_v47  ;;  %v836_v52 = vmul.f32 %v808_v48, %v2066_v53 }
 0x504   : > { %v863_v54 = vadd.f32 1.0, %v1252_v50 }
 0x505   : > { %1255 = vpow2.f32 %v860_v51  ;;  %v2113_v55 = vadd.f32 %v844_v42, %v836_v52 }
 0x506   : > { %v867_v56 = vmul.f32 %v863_v54, %v863_v54 }
 0x507   : > { %v852_v58 = vmin.f32 %v2113_v55, 20.0 }
 0x508   : > { %v871_v1 = vadd.f32 1.0, %v867_v56  ;;  %v1180_v3 = vadd.f32 -1.0, %v867_v56 }
 0x509   : > { %v1254_v2 = vpop.eup %1253  ;;  %v858_v17 = vmul.f32 1.442695, %v852_v58 }
 0x50a   : > { %1257 = vrcp.f32 %v871_v1  ;;  %v862_v28 = vadd.f32 1.0, %v1254_v2  ;;  %v900_v61 = vand.u32 2147483648, %v871_v1  ;;  %v898_v0 = vand.u32 2147483647, %v871_v1 }
 0x50b   : > { %v1256_v24 = vpop.eup %1255  ;;  %1259 = vpow2.f32 %v858_v17  ;;  %vm894_vm13 = vweird.f32 %v871_v1  ;;  %v939_v14 = vmul.f32 %v1180_v3, %v847_v31 }
 0x50c   : > { %v865_v32 = vadd.f32 1.0, %v1256_v24  ;;  %v866_v36 = vmul.f32 %v862_v28, %v862_v28  ;;  %v901_v10 = vor.u32 1.1754944e-38, %v900_v61  ;;  %vm899_vm2 = vcmp.eq.f32.partialorder %v898_v0, 8.507059e+37 }
 0x50e   : > { %v869_v41 = vmul.f32 %v865_v32, %v865_v32  ;;  %v870_v45 = vadd.f32 1.0, %v866_v36  ;;  %v1179_v19 = vadd.f32 -1.0, %v866_v36 }
 0x510   : > { %v1258_v49 = vpop.eup %1257  ;;  %v873_v53 = vadd.f32 1.0, %v869_v41  ;;  %1261 = vrcp.f32 %v870_v45  ;;  %v885_v6 = vand.u32 2147483648, %v870_v45  ;;  %v1182_v22 = vadd.f32 -1.0, %v869_v41 }
 0x511   : > { %v1260_v57 = vpop.eup %1259  ;;  %v890_v59 = vmul.f32 %v1258_v49, %v871_v1  ;;  %vm895_vm1 = vweird.f32 %v1258_v49  ;;  %v883_v25 = vand.u32 2147483647, %v870_v45  ;;  %vm879_vm6 = vweird.f32 %v870_v45 }
 0x512   : > { %1263 = vrcp.f32 %v873_v53  ;;  %v864_v62 = vadd.f32 1.0, %v1260_v57  ;;  %vm896_vm12 = vmor %vm894_vm13, %vm895_vm1  ;;  %v930_v26 = vand.u32 2147483648, %v873_v53  ;;  %v928_v20 = vand.u32 2147483647, %v873_v53 }
 0x513   : > { %v891_v60 = vsub.f32 1.0, %v890_v59  ;;  %v886_v30 = vor.u32 1.1754944e-38, %v885_v6  ;;  %v938_v31 = vmul.f32 %v1179_v19, %v2105_v39  ;;  %vm924_vm5 = vweird.f32 %v873_v53 }
 0x514   : > { %v868_v5 = vmul.f32 %v864_v62, %v864_v62  ;;  %vm884_vm9 = vcmp.eq.f32.partialorder %v883_v25, 8.507059e+37  ;;  %v931_v37 = vor.u32 1.1754944e-38, %v930_v26  ;;  %v941_v38 = vmul.f32 %v1182_v22, %v2109_v44 }
 0x515   : > { %v892_v63 = vmul.f32 %v1258_v49, %v891_v60  ;;  %vm929_vm4 = vcmp.eq.f32.partialorder %v928_v20, 8.507059e+37 }
 0x516   : > { %v1262_v7 = vpop.eup %1261  ;;  %v872_v12 = vadd.f32 1.0, %v868_v5  ;;  %v1181_v52 = vadd.f32 -1.0, %v868_v5 }
 0x517   : > { %v893_v8 = vadd.f32 %v1258_v49, %v892_v63  ;;  %v875_v11 = vmul.f32 %v1262_v7, %v870_v45  ;;  %vm880_vm8 = vweird.f32 %v1262_v7 }
 0x518   : > { %v1264_v9 = vpop.eup %1263  ;;  %1265 = vrcp.f32 %v872_v12  ;;  %vm881_vm0 = vmor %vm879_vm6, %vm880_vm8  ;;  %v915_v50 = vand.u32 2147483648, %v872_v12  ;;  %v913_v44 = vand.u32 2147483647, %v872_v12  ;;  %vm909_vm3 = vweird.f32 %v872_v12 }
 0x519   : > { %v897_v13 = vsel %vm896_vm12, %v1258_v49, %v893_v8  ;;  %v920_v15 = vmul.f32 %v1264_v9, %v873_v53  ;;  %v876_v18 = vsub.f32 1.0, %v875_v11  ;;  %vm925_vm15 = vweird.f32 %v1264_v9 }
 0x51a   : > { %v902_v16 = vsel %vm899_vm2, %v901_v10, %v897_v13  ;;  %vm926_vm14 = vmor %vm924_vm5, %vm925_vm15  ;;  %v916_v56 = vor.u32 1.1754944e-38, %v915_v50  ;;  %vm914_vm7 = vcmp.eq.f32.partialorder %v913_v44, 8.507059e+37  ;;  %v940_v1 = vmul.f32 %v1181_v52, %v2113_v55 }
 0x51b   : > { %v943_v4 = vmul.f32 %v939_v14, %v902_v16  ;;  %v921_v21 = vsub.f32 1.0, %v920_v15  ;;  %v877_v23 = vmul.f32 %v1262_v7, %v876_v18 }
 0x51d   : > { %947 = vst [vmem:[%s2117_s22 + $0x8] sm:$0xff] %v943_v4  ;;  %v922_v27 = vmul.f32 %v1264_v9, %v921_v21  ;;  %v878_v29 = vadd.f32 %v1262_v7, %v877_v23 }
 0x51e   : > { %v1266_v34 = vpop.eup %1265 }
 0x51f   : > { %v923_v33 = vadd.f32 %v1264_v9, %v922_v27  ;;  %v882_v35 = vsel %vm881_vm0, %v1262_v7, %v878_v29  ;;  %v905_v43 = vmul.f32 %v1266_v34, %v872_v12  ;;  %vm910_vm11 = vweird.f32 %v1266_v34 }
 0x520   : > { %v887_v40 = vsel %vm884_vm9, %v886_v30, %v882_v35  ;;  %vm911_vm10 = vmor %vm909_vm3, %vm910_vm11 }
 0x521   : > { %v927_v42 = vsel %vm926_vm14, %v1264_v9, %v923_v33  ;;  %v942_v46 = vmul.f32 %v938_v31, %v887_v40  ;;  %v906_v48 = vsub.f32 1.0, %v905_v43 }
 0x522   : > { %v932_v47 = vsel %vm929_vm4, %v931_v37, %v927_v42 }
 0x523   : > { %v945_v39 = vmul.f32 %v941_v38, %v932_v47  ;;  %946 = vst [vmem:[%s2117_s22] sm:$0xff] %v942_v46  ;;  %v907_v51 = vmul.f32 %v1266_v34, %v906_v48 }
 0x525   : > { %949 = vst [vmem:[%s2117_s22 + $0x18] sm:$0xff] %v945_v39  ;;  %v908_v54 = vadd.f32 %v1266_v34, %v907_v51 }
 0x527   : > { %v912_v58 = vsel %vm911_vm10, %v1266_v34, %v908_v54 }
 0x528   : > { %v917_v2 = vsel %vm914_vm7, %v916_v56, %v912_v58 }
 0x529   : > { %v944_v17 = vmul.f32 %v940_v1, %v917_v2 }
 0x52b   : > { %948 = vst [vmem:[%s2117_s22 + $0x10] sm:$0xff] %v944_v17 }
 0x52c   : > { %1324 = shalt.err (!%p1321_p7)
}
 0x52d   : > { %s1372_s30 = smov 256   ;;  %s1373_s17 = smov 512  }
 0x52e   : > { %s1374_s19 = smov 16  }
 0x52f   : > { %1192 = dma.vmem_to_hbm [thread:$0]  (%p1445_p11), %s964_s4, 512, %s966_s16, %s951_s6, %s1372_s30, %s1373_s17, %s1374_s19  }
 0x530 PF: > { %s980_s20 = sand.u32 1, %s1351_s12   ;;  %p1199_p8 = pnand %p1041_p9, %p1449_p12 }
 0x531   : > { %s981_s22 = scalar_lea.sflag [#allocation4], %s980_s20 }
 0x532   : > { %p1200_p10 = pneg %p1199_p8 }
 0x534   : > { %1346 = dma.done.wait (%p1200_p10), %s981_s22, 512  }
 0x535   : > { %1348 = vsyncadd (%p1200_p10), %s981_s22, 4294966784  ;;  %p16_p1 = scmp.ge.s32.totalorder %s1420_s18, 4   ;;  %s2292_s12 = smov %s1355_s13 }
 0x536   : > { %s2293_s13 = smov %s1359_s14  ;;  %s2294_s14 = smov %s1432_s21 }
 0x537   : > { %s2295_s15 = smov %s1420_s18  ;;  %18 = sbr.rel (!%p16_p1) target bundleno = 5 (0x5), region = 77 }
 0x53c   :  { %987 = vsyncpa [#allocation3], 1 }
 0x53d   :  { %989 = vsyncpa [#allocation3 + $0x1], 1 }
 0x53e   :  { %990 = vsyncpa [#allocation4], 1 }
 0x53f   :  { %992 = vsyncpa [#allocation4 + $0x1], 1 }

</bundles_post_ra>
